<compile_context>
chip_gen: v5e
topology: v5e:2x2
jax: 0.10.0
libtpu: 0.0.40
codegen_flags: <defaults>
</compile_context>

<pallas_src>
import jax
import jax.numpy as jnp
import numpy as np
from jax.experimental import pallas as pl
from jax.experimental.pallas import tpu as pltpu

# Shapes consistent with the module (hidden_size = 128 in the spec).
HIDDEN = 128       # hidden_size
OUT_SIZE = 64      # vocabulary (out_size)
MAX_LEN = 16       # max_length (encoder sequence length)

LANE = 128
LP = LANE          # lane-padded max_length
VP = LANE          # lane-padded vocabulary
H = HIDDEN

NEG = -1e30        # "-inf" bias for padded softmax positions (exp underflows to 0)

# Shared column layout of the packed weight [H, 1280] and bias [1, 1280] buffers.
C_E0, C_E1 = 0, LP + H                    # emb @ [wa[:H] | wc[:H]]   -> [1, LP+H]
C_H0, C_H1 = C_E1, C_E1 + LP + 3 * H      # h   @ [wa[H:] | whh]      -> [1, LP+3H]
C_I0, C_I1 = C_H1, C_H1 + 3 * H           # x   @ wih                 -> [1, 3H]
C_O0, C_O1 = C_I1, C_I1 + VP              # h'  @ wo (lane padded)    -> [1, VP]
PACK_COLS = C_O1                          # 1280

# Lane offsets inside the per-step fused output row: [1, 384]
O_LOGP0, O_LOGP1 = 0, VP
O_ATTN0, O_ATTN1 = VP, VP + LP
O_HID0, O_HID1 = VP + LP, VP + LP + H
OUT_COLS = O_HID1                         # 384


def decoder_kernel(tok_ref,          # scalar prefetch: [T] int32 token ids (SMEM)
                   emb_ref,          # [1, 1, H]  gathered embedding row (bf16)
                   h0_ref,           # [1, H]     initial hidden (f32, resident)
                   e2_ref,           # [LP, H]    enc @ wc_ctx (bf16, resident)
                   w_ref,            # [H, 1280]  packed fused weights (bf16, resident)
                   b_ref,            # [1, 1280]  packed biases (f32, resident)
                   out_ref,          # [1, 1, 384] per-step [log_probs | attn | h_new]
                   h_scr):           # VMEM scratch [1, H] f32: carried hidden state
    f32 = jnp.float32
    bf16 = jnp.bfloat16
    step = pl.program_id(0)

    @pl.when(step == 0)
    def _():
        h_scr[...] = h0_ref[...]

    h = h_scr[...]                               # [1, H] f32 (carried hidden)
    emb = emb_ref[0]                             # [1, H] bf16 (this step's embedding)
    hb = h.astype(bf16)

    # Fused shared-operand projections (bf16 MXU operands, f32 accumulation).
    #   ph = [attention logits (h part) | GRU hidden gates gh + bhh]
    ph = jnp.dot(hb, w_ref[:, C_H0:C_H1], preferred_element_type=f32) + b_ref[:, C_H0:C_H1]
    #   pe = [attention logits (emb part) + ba | attn_combine (emb part) + bc]
    pe = jnp.dot(emb, w_ref[:, C_E0:C_E1], preferred_element_type=f32) + b_ref[:, C_E0:C_E1]

    # --- attention softmax over (padded) encoder positions ---------------------
    logits = pe[:, :LP] + ph[:, :LP]             # padded lanes carry the NEG bias
    m = jnp.max(logits, axis=1, keepdims=True)
    e = jnp.exp(logits - m)                      # padded lanes -> exactly 0
    inv = pl.reciprocal(jnp.sum(e, axis=1, keepdims=True), approx=False)
    attn = e * inv                               # [1, LP] f32

    # --- attn_combine + relu (encoder projection folded: attn@E2 == ctx@wc_ctx) -
    comb = pe[:, LP:] + jnp.dot(attn.astype(bf16), e2_ref[...], preferred_element_type=f32)
    x = jnp.maximum(comb, 0.0)                   # [1, H] f32

    # --- GRU cell (PyTorch gate order r, z, n); gates sit on 128-lane blocks ----
    gi = jnp.dot(x.astype(bf16), w_ref[:, C_I0:C_I1], preferred_element_type=f32) + b_ref[:, C_I0:C_I1]
    gh = ph[:, LP:]                              # [1, 3H] (hoisted h @ whh + bhh)
    r = jax.nn.sigmoid(gi[:, 0:H] + gh[:, 0:H])
    z = jax.nn.sigmoid(gi[:, H:2 * H] + gh[:, H:2 * H])
    n = jnp.tanh(gi[:, 2 * H:] + r * gh[:, 2 * H:])
    h_new = (1.0 - z) * n + z * h                # [1, H] f32

    # --- output projection + log_softmax (padded vocab lanes carry NEG bias) ----
    o = jnp.dot(h_new.astype(bf16), w_ref[:, C_O0:C_O1], preferred_element_type=f32) + b_ref[:, C_O0:C_O1]
    mo = jnp.max(o, axis=1, keepdims=True)
    lse = jnp.log(jnp.sum(jnp.exp(o - mo), axis=1, keepdims=True)) + mo

    out_ref[0, :, O_LOGP0:O_LOGP1] = o - lse
    out_ref[0, :, O_ATTN0:O_ATTN1] = attn
    out_ref[0, :, O_HID0:O_HID1] = h_new
    h_scr[...] = h_new                           # carry hidden to the next grid step


# ----------------------------------------------------------------------------- wrapper

def _pad_cols(x, width, value=0.0):
    pad = width - x.shape[1]
    if pad <= 0:
        return x
    return jnp.concatenate([x, jnp.full((x.shape[0], pad), value, x.dtype)], axis=1)


def _pad_rows(x, height, value=0.0):
    pad = height - x.shape[0]
    if pad <= 0:
        return x
    return jnp.concatenate([x, jnp.full((pad, x.shape[1]), value, x.dtype)], axis=0)


def pack_params(p):
    """Fuse + lane-pad + pack decoder params (ONCE, outside any decode loop)."""
    w_e = jnp.concatenate([_pad_cols(p["wa"][:H], LP), p["wc"][:H]], axis=1)      # [H, LP+H]
    w_h = jnp.concatenate([_pad_cols(p["wa"][H:], LP), p["whh"]], axis=1)         # [H, LP+3H]
    w_all = jnp.concatenate(
        [w_e, w_h, p["wih"], _pad_cols(p["wo"], VP)], axis=1).astype(jnp.bfloat16)  # [H, 1280]

    b_e = jnp.concatenate([_pad_cols(p["ba"], LP, NEG), p["bc"]], axis=1)         # [1, LP+H]
    b_h = jnp.concatenate([jnp.zeros((1, LP), jnp.float32), p["bhh"]], axis=1)    # [1, LP+3H]
    b_all = jnp.concatenate(
        [b_e, b_h, p["bih"], _pad_cols(p["bo"], VP, NEG)], axis=1)                # [1, 1280] f32

    emb = p["emb"].astype(jnp.bfloat16).reshape(OUT_SIZE, 1, H)                   # [V, 1, H]
    return {"emb": emb, "w_all": w_all, "b_all": b_all, "wc_ctx": p["wc"][H:]}


def decoder_decode(tokens, encoder_outputs, hidden0, packed):
    """Full teacher-forced decode (T steps) in a single fused Pallas call."""
    tokens = jnp.clip(jnp.asarray(tokens, jnp.int32), 0, OUT_SIZE - 1)
    T = int(tokens.shape[0])

    # Per-sequence fold of the encoder projection: attn @ E2 == (attn @ enc) @ wc_ctx.
    enc_p = _pad_rows(encoder_outputs.astype(jnp.float32), LP)                    # [LP, H]
    e2 = (enc_p @ packed["wc_ctx"]).astype(jnp.bfloat16)                          # [LP, H]

    grid_spec = pltpu.PrefetchScalarGridSpec(
        num_scalar_prefetch=1,
        grid=(T,),
        in_specs=[
            # Embedding row gather driven by the prefetched token array (256 B/step).
            pl.BlockSpec((1, 1, H), lambda i, tok: (tok[i], 0, 0)),
            # Everything below has a constant index_map -> DMA'd once, VMEM-resident.
            pl.BlockSpec((1, H), lambda i, tok: (0, 0)),                # h0
            pl.BlockSpec((LP, H), lambda i, tok: (0, 0)),               # E2
            pl.BlockSpec((H, PACK_COLS), lambda i, tok: (0, 0)),        # w_all
            pl.BlockSpec((1, PACK_COLS), lambda i, tok: (0, 0)),        # b_all
        ],
        out_specs=pl.BlockSpec((1, 1, OUT_COLS), lambda i, tok: (i, 0, 0)),
        scratch_shapes=[pltpu.VMEM((1, H), jnp.float32)],               # carried hidden
    )

    out = pl.pallas_call(
        decoder_kernel,
        out_shape=jax.ShapeDtypeStruct((T, 1, OUT_COLS), jnp.float32),
        grid_spec=grid_spec,
        compiler_params=pltpu.CompilerParams(dimension_semantics=("arbitrary",)),
    )(tokens, packed["emb"], hidden0.astype(jnp.float32), e2,
      packed["w_all"], packed["b_all"])

    out = out[:, 0, :]                                   # [T, 384]
    log_probs = out[:, O_LOGP0:O_LOGP0 + OUT_SIZE]       # [T, V]
    attn_w = out[:, O_ATTN0:O_ATTN0 + MAX_LEN]           # [T, L]
    h_final = out[T - 1:T, O_HID0:O_HID1]                # [1, H]
    return log_probs, attn_w, h_final


# ----------------------------------------------------------------------------- test utils

def make_params(key):
    """Deterministic synthetic parameters (transposed to [in, out] layout)."""
    V, L = OUT_SIZE, MAX_LEN
    ks = jax.random.split(key, 12)
    s = 0.1
    p = {
        "emb": s * jax.random.normal(ks[0], (V, H), jnp.float32),
        "wa":  s * jax.random.normal(ks[1], (2 * H, L), jnp.float32),
        "ba":  s * jax.random.normal(ks[2], (1, L), jnp.float32),
        "wc":  s * jax.random.normal(ks[3], (2 * H, H), jnp.float32),
        "bc":  s * jax.random.normal(ks[4], (1, H), jnp.float32),
        "wih": s * jax.random.normal(ks[5], (H, 3 * H), jnp.float32),
        "whh": s * jax.random.normal(ks[6], (H, 3 * H), jnp.float32),
        "bih": s * jax.random.normal(ks[7], (1, 3 * H), jnp.float32),
        "bhh": s * jax.random.normal(ks[8], (1, 3 * H), jnp.float32),
        "wo":  s * jax.random.normal(ks[9], (H, V), jnp.float32),
        "bo":  s * jax.random.normal(ks[10], (1, V), jnp.float32),
    }
    return p, ks[11]


def decoder_reference_step(token, encoder_outputs, hidden, params):
    """Pure-JAX f32 reference of the PyTorch forward (eval mode), one step."""
    emb = params["emb"][token][None, :]
    cat1 = jnp.concatenate([emb, hidden], axis=1)
    attn = jax.nn.softmax(cat1 @ params["wa"] + params["ba"], axis=1)
    ctx = attn @ encoder_outputs
    cat2 = jnp.concatenate([emb, ctx], axis=1)
    x = jax.nn.relu(cat2 @ params["wc"] + params["bc"])
    gi = x @ params["wih"] + params["bih"]
    gh = hidden @ params["whh"] + params["bhh"]
    r = jax.nn.sigmoid(gi[:, :H] + gh[:, :H])
    z = jax.nn.sigmoid(gi[:, H:2 * H] + gh[:, H:2 * H])
    n = jnp.tanh(gi[:, 2 * H:] + r * gh[:, 2 * H:])
    h_new = (1.0 - z) * n + z * hidden
    logp = jax.nn.log_softmax(h_new @ params["wo"] + params["bo"], axis=1)
    return logp, attn, h_new


def decoder_reference_sequence(tokens, encoder_outputs, hidden, params):
    logps, attns = [], []
    for t in np.asarray(tokens):
        logp, attn, hidden = decoder_reference_step(int(t), encoder_outputs, hidden, params)
        logps.append(logp)
        attns.append(attn)
    return jnp.concatenate(logps, 0), jnp.concatenate(attns, 0), hidden


if __name__ == "__main__":
    key = jax.random.PRNGKey(0)
    params, key = make_params(key)
    packed = pack_params(params)                         # one-time weight packing (bf16)

    k_enc, _ = jax.random.split(key)
    encoder_outputs = jax.random.normal(k_enc, (MAX_LEN, HIDDEN), jnp.float32)
    hidden0 = jnp.zeros((1, HIDDEN), jnp.float32)        # init_hidden()
    tokens = jnp.array([3, 10, 1, 7, 25, 40, 63, 0], dtype=jnp.int32)   # teacher-forced, T=8

    logp, attn_w, h_fin = decoder_decode(tokens, encoder_outputs, hidden0, packed)
    jax.block_until_ready((logp, attn_w, h_fin))

    ref_logp, ref_attn, ref_h = decoder_reference_sequence(tokens, encoder_outputs, hidden0, params)

    # bf16 MXU operands -> relaxed tolerance (expected precision tradeoff, not a bug).
    np.testing.assert_allclose(np.asarray(logp), np.asarray(ref_logp), rtol=5e-2, atol=5e-2)
    np.testing.assert_allclose(np.asarray(attn_w), np.asarray(ref_attn), rtol=5e-2, atol=5e-2)
    np.testing.assert_allclose(np.asarray(h_fin), np.asarray(ref_h), rtol=5e-2, atol=5e-2)

    print("KERNEL_OK")
</pallas_src>

<mosaic_0001>
module attributes {stable_mosaic.version = 11 : i64} {
  func.func @decoder_kernel(%arg0: i32, %arg1: memref<8xi32, #tpu.memory_space<smem>>, %arg2: memref<1x1x128xbf16, #tpu.memory_space<vmem>>, %arg3: memref<1x128xf32, #tpu.memory_space<vmem>>, %arg4: memref<128x128xbf16, #tpu.memory_space<vmem>>, %arg5: memref<128x1280xbf16, #tpu.memory_space<vmem>>, %arg6: memref<1x1280xf32, #tpu.memory_space<vmem>>, %arg7: memref<1x1x384xf32, #tpu.memory_space<vmem>>, %arg8: memref<1x128xf32, #tpu.memory_space<vmem>>) attributes {dimension_semantics = [#tpu.dimension_semantics<arbitrary>], iteration_bounds = array<i64: 8>, scalar_prefetch = 1 : i64, scratch_operands = 1 : i64, tpu.core_type = #tpu.core_type<tc>, window_params = [{transform_indices = @transform_0, window_bounds = array<i64: 1, 1, 128>}, {pipeline_mode = #tpu.pipeline_mode<synchronous>, transform_indices = @transform_1, window_bounds = array<i64: 1, 128>}, {pipeline_mode = #tpu.pipeline_mode<synchronous>, transform_indices = @transform_2, window_bounds = array<i64: 128, 128>}, {pipeline_mode = #tpu.pipeline_mode<synchronous>, transform_indices = @transform_3, window_bounds = array<i64: 128, 1280>}, {pipeline_mode = #tpu.pipeline_mode<synchronous>, transform_indices = @transform_4, window_bounds = array<i64: 1, 1280>}, {transform_indices = @transform_5, window_bounds = array<i64: 1, 1, 384>}]} {
    %c0_i32 = arith.constant 0 : i32
    %0 = arith.cmpi eq, %arg0, %c0_i32 : i32
    %1 = arith.extui %0 : i1 to i32
    %c0_i32_0 = arith.constant 0 : i32
    %2 = arith.cmpi ne, %1, %c0_i32_0 : i32
    scf.if %2 {
      %c0_42 = arith.constant 0 : index
      %c0_43 = arith.constant 0 : index
      %93 = vector.load %arg3[%c0_42, %c0_43] : memref<1x128xf32, #tpu.memory_space<vmem>>, vector<1x128xf32>
      %c0_44 = arith.constant 0 : index
      %c0_45 = arith.constant 0 : index
      %94 = vector.load %arg8[%c0_44, %c0_45] : memref<1x128xf32, #tpu.memory_space<vmem>>, vector<1x128xf32>
      tpu.vector_store %arg8[%c0_44, %c0_45], %93 {strides = array<i32>} : memref<1x128xf32, #tpu.memory_space<vmem>>, vector<1x128xf32>,
    } else {
    }
    %c0 = arith.constant 0 : index
    %c0_1 = arith.constant 0 : index
    %3 = vector.load %arg8[%c0, %c0_1] : memref<1x128xf32, #tpu.memory_space<vmem>>, vector<1x128xf32>
    %c0_2 = arith.constant 0 : index
    %c0_3 = arith.constant 0 : index
    %c0_4 = arith.constant 0 : index
    %4 = vector.load %arg2[%c0_2, %c0_3, %c0_4] : memref<1x1x128xbf16, #tpu.memory_space<vmem>>, vector<1x1x128xbf16>
    %5 = vector.shape_cast %4 : vector<1x1x128xbf16> to vector<1x128xbf16>
    %6 = arith.truncf %3 : vector<1x128xf32> to vector<1x128xbf16>
    %c0_5 = arith.constant 0 : index
    %c256 = arith.constant 256 : index
    %7 = vector.load %arg5[%c0_5, %c256] : memref<128x1280xbf16, #tpu.memory_space<vmem>>, vector<128x512xbf16>
    %cst = arith.constant dense<0.000000e+00> : vector<1x512xf32>
    %8 = tpu.matmul %6, %7, %cst {dimension_numbers = #tpu.dot_dimension_numbers<[1], [0], [0], [1], [0, 0, 1, 1], [], []>} : vector<1x128xbf16>, vector<128x512xbf16>, vector<1x512xf32> -> vector<1x512xf32>
    %c0_6 = arith.constant 0 : index
    %c256_7 = arith.constant 256 : index
    %9 = vector.load %arg6[%c0_6, %c256_7] : memref<1x1280xf32, #tpu.memory_space<vmem>>, vector<1x512xf32>
    %10 = arith.addf %8, %9 : vector<1x512xf32>
    %c0_8 = arith.constant 0 : index
    %c0_9 = arith.constant 0 : index
    %11 = vector.load %arg5[%c0_8, %c0_9] : memref<128x1280xbf16, #tpu.memory_space<vmem>>, vector<128x256xbf16>
    %cst_10 = arith.constant dense<0.000000e+00> : vector<1x256xf32>
    %12 = tpu.matmul %5, %11, %cst_10 {dimension_numbers = #tpu.dot_dimension_numbers<[1], [0], [0], [1], [0, 0, 1, 1], [], []>} : vector<1x128xbf16>, vector<128x256xbf16>, vector<1x256xf32> -> vector<1x256xf32>
    %c0_11 = arith.constant 0 : index
    %c0_12 = arith.constant 0 : index
    %13 = vector.load %arg6[%c0_11, %c0_12] : memref<1x1280xf32, #tpu.memory_space<vmem>>, vector<1x256xf32>
    %14 = arith.addf %12, %13 : vector<1x256xf32>
    %15 = vector.extract_strided_slice %14 {offsets = [0, 0], sizes = [1, 128], strides = [1, 1]} : vector<1x256xf32> to vector<1x128xf32>
    %16 = vector.extract_strided_slice %10 {offsets = [0, 0], sizes = [1, 128], strides = [1, 1]} : vector<1x512xf32> to vector<1x128xf32>
    %17 = arith.addf %15, %16 : vector<1x128xf32>
    %cst_13 = arith.constant dense<0xFF800000> : vector<1xf32>
    %18 = vector.multi_reduction <maximumf>, %17, %cst_13 [1] : vector<1x128xf32> to vector<1xf32>
    %19 = vector.shape_cast %18 : vector<1xf32> to vector<1x1xf32>
    %20 = vector.broadcast %19 : vector<1x1xf32> to vector<1x128xf32>
    %21 = arith.subf %17, %20 : vector<1x128xf32>
    %22 = math.exp %21 : vector<1x128xf32>
    %cst_14 = arith.constant dense<0.000000e+00> : vector<1xf32>
    %23 = vector.multi_reduction <add>, %22, %cst_14 [1] : vector<1x128xf32> to vector<1xf32>
    %24 = vector.shape_cast %23 : vector<1xf32> to vector<1x1xf32>
    %25 = tpu.reciprocal %24 : vector<1x1xf32> -> vector<1x1xf32>
    %26 = vector.broadcast %25 : vector<1x1xf32> to vector<1x128xf32>
    %27 = arith.mulf %22, %26 : vector<1x128xf32>
    %28 = vector.extract_strided_slice %14 {offsets = [0, 128], sizes = [1, 128], strides = [1, 1]} : vector<1x256xf32> to vector<1x128xf32>
    %29 = arith.truncf %27 : vector<1x128xf32> to vector<1x128xbf16>
    %c0_15 = arith.constant 0 : index
    %c0_16 = arith.constant 0 : index
    %30 = vector.load %arg4[%c0_15, %c0_16] : memref<128x128xbf16, #tpu.memory_space<vmem>>, vector<128x128xbf16>
    %cst_17 = arith.constant dense<0.000000e+00> : vector<1x128xf32>
    %31 = tpu.matmul %29, %30, %cst_17 {dimension_numbers = #tpu.dot_dimension_numbers<[1], [0], [0], [1], [0, 0, 1, 1], [], []>} : vector<1x128xbf16>, vector<128x128xbf16>, vector<1x128xf32> -> vector<1x128xf32>
    %32 = arith.addf %28, %31 : vector<1x128xf32>
    %cst_18 = arith.constant 0.000000e+00 : f32
    %33 = vector.broadcast %cst_18 : f32 to vector<1x128xf32>
    %34 = arith.maximumf %32, %33 : vector<1x128xf32>
    %35 = arith.truncf %34 : vector<1x128xf32> to vector<1x128xbf16>
    %c0_19 = arith.constant 0 : index
    %c768 = arith.constant 768 : index
    %36 = vector.load %arg5[%c0_19, %c768] : memref<128x1280xbf16, #tpu.memory_space<vmem>>, vector<128x384xbf16>
    %cst_20 = arith.constant dense<0.000000e+00> : vector<1x384xf32>
    %37 = tpu.matmul %35, %36, %cst_20 {dimension_numbers = #tpu.dot_dimension_numbers<[1], [0], [0], [1], [0, 0, 1, 1], [], []>} : vector<1x128xbf16>, vector<128x384xbf16>, vector<1x384xf32> -> vector<1x384xf32>
    %c0_21 = arith.constant 0 : index
    %c768_22 = arith.constant 768 : index
    %38 = vector.load %arg6[%c0_21, %c768_22] : memref<1x1280xf32, #tpu.memory_space<vmem>>, vector<1x384xf32>
    %39 = arith.addf %37, %38 : vector<1x384xf32>
    %40 = vector.extract_strided_slice %10 {offsets = [0, 128], sizes = [1, 384], strides = [1, 1]} : vector<1x512xf32> to vector<1x384xf32>
    %41 = vector.extract_strided_slice %39 {offsets = [0, 0], sizes = [1, 128], strides = [1, 1]} : vector<1x384xf32> to vector<1x128xf32>
    %42 = vector.extract_strided_slice %40 {offsets = [0, 0], sizes = [1, 128], strides = [1, 1]} : vector<1x384xf32> to vector<1x128xf32>
    %43 = arith.addf %41, %42 : vector<1x128xf32>
    %44 = arith.negf %43 : vector<1x128xf32>
    %45 = math.exp %44 : vector<1x128xf32>
    %cst_23 = arith.constant 1.000000e+00 : f32
    %46 = vector.broadcast %cst_23 : f32 to vector<1x128xf32>
    %47 = arith.addf %46, %45 : vector<1x128xf32>
    %48 = arith.divf %46, %47 : vector<1x128xf32>
    %49 = vector.extract_strided_slice %39 {offsets = [0, 128], sizes = [1, 128], strides = [1, 1]} : vector<1x384xf32> to vector<1x128xf32>
    %50 = vector.extract_strided_slice %40 {offsets = [0, 128], sizes = [1, 128], strides = [1, 1]} : vector<1x384xf32> to vector<1x128xf32>
    %51 = arith.addf %49, %50 : vector<1x128xf32>
    %52 = arith.negf %51 : vector<1x128xf32>
    %53 = math.exp %52 : vector<1x128xf32>
    %cst_24 = arith.constant 1.000000e+00 : f32
    %54 = vector.broadcast %cst_24 : f32 to vector<1x128xf32>
    %55 = arith.addf %54, %53 : vector<1x128xf32>
    %56 = arith.divf %54, %55 : vector<1x128xf32>
    %57 = vector.extract_strided_slice %39 {offsets = [0, 256], sizes = [1, 128], strides = [1, 1]} : vector<1x384xf32> to vector<1x128xf32>
    %58 = vector.extract_strided_slice %40 {offsets = [0, 256], sizes = [1, 128], strides = [1, 1]} : vector<1x384xf32> to vector<1x128xf32>
    %59 = arith.mulf %48, %58 : vector<1x128xf32>
    %60 = arith.addf %57, %59 : vector<1x128xf32>
    %61 = math.tanh %60 : vector<1x128xf32>
    %cst_25 = arith.constant 1.000000e+00 : f32
    %62 = vector.broadcast %cst_25 : f32 to vector<1x128xf32>
    %63 = arith.subf %62, %56 : vector<1x128xf32>
    %64 = arith.mulf %63, %61 : vector<1x128xf32>
    %65 = arith.mulf %56, %3 : vector<1x128xf32>
    %66 = arith.addf %64, %65 : vector<1x128xf32>
    %67 = arith.truncf %66 : vector<1x128xf32> to vector<1x128xbf16>
    %c0_26 = arith.constant 0 : index
    %c1152 = arith.constant 1152 : index
    %68 = vector.load %arg5[%c0_26, %c1152] : memref<128x1280xbf16, #tpu.memory_space<vmem>>, vector<128x128xbf16>
    %cst_27 = arith.constant dense<0.000000e+00> : vector<1x128xf32>
    %69 = tpu.matmul %67, %68, %cst_27 {dimension_numbers = #tpu.dot_dimension_numbers<[1], [0], [0], [1], [0, 0, 1, 1], [], []>} : vector<1x128xbf16>, vector<128x128xbf16>, vector<1x128xf32> -> vector<1x128xf32>
    %c0_28 = arith.constant 0 : index
    %c1152_29 = arith.constant 1152 : index
    %70 = vector.load %arg6[%c0_28, %c1152_29] : memref<1x1280xf32, #tpu.memory_space<vmem>>, vector<1x128xf32>
    %71 = arith.addf %69, %70 : vector<1x128xf32>
    %cst_30 = arith.constant dense<0xFF800000> : vector<1xf32>
    %72 = vector.multi_reduction <maximumf>, %71, %cst_30 [1] : vector<1x128xf32> to vector<1xf32>
    %73 = vector.shape_cast %72 : vector<1xf32> to vector<1x1xf32>
    %74 = vector.broadcast %73 : vector<1x1xf32> to vector<1x128xf32>
    %75 = arith.subf %71, %74 : vector<1x128xf32>
    %76 = math.exp %75 : vector<1x128xf32>
    %cst_31 = arith.constant dense<0.000000e+00> : vector<1xf32>
    %77 = vector.multi_reduction <add>, %76, %cst_31 [1] : vector<1x128xf32> to vector<1xf32>
    %78 = vector.shape_cast %77 : vector<1xf32> to vector<1x1xf32>
    %79 = math.log %78 : vector<1x1xf32>
    %80 = arith.addf %79, %73 : vector<1x1xf32>
    %81 = vector.broadcast %80 : vector<1x1xf32> to vector<1x128xf32>
    %82 = arith.subf %71, %81 : vector<1x128xf32>
    %c0_32 = arith.constant 0 : index
    %c0_33 = arith.constant 0 : index
    %c0_34 = arith.constant 0 : index
    %83 = vector.load %arg7[%c0_32, %c0_33, %c0_34] : memref<1x1x384xf32, #tpu.memory_space<vmem>>, vector<1x1x128xf32>
    %84 = vector.shape_cast %83 : vector<1x1x128xf32> to vector<1x128xf32>
    %85 = vector.shape_cast %82 : vector<1x128xf32> to vector<1x1x128xf32>
    tpu.vector_store %arg7[%c0_32, %c0_33, %c0_34], %85 {strides = array<i32>} : memref<1x1x384xf32, #tpu.memory_space<vmem>>, vector<1x1x128xf32>,
    %c0_35 = arith.constant 0 : index
    %c0_36 = arith.constant 0 : index
    %c128 = arith.constant 128 : index
    %86 = vector.load %arg7[%c0_35, %c0_36, %c128] : memref<1x1x384xf32, #tpu.memory_space<vmem>>, vector<1x1x128xf32>
    %87 = vector.shape_cast %86 : vector<1x1x128xf32> to vector<1x128xf32>
    %88 = vector.shape_cast %27 : vector<1x128xf32> to vector<1x1x128xf32>
    tpu.vector_store %arg7[%c0_35, %c0_36, %c128], %88 {strides = array<i32>} : memref<1x1x384xf32, #tpu.memory_space<vmem>>, vector<1x1x128xf32>,
    %c0_37 = arith.constant 0 : index
    %c0_38 = arith.constant 0 : index
    %c256_39 = arith.constant 256 : index
    %89 = vector.load %arg7[%c0_37, %c0_38, %c256_39] : memref<1x1x384xf32, #tpu.memory_space<vmem>>, vector<1x1x128xf32>
    %90 = vector.shape_cast %89 : vector<1x1x128xf32> to vector<1x128xf32>
    %91 = vector.shape_cast %66 : vector<1x128xf32> to vector<1x1x128xf32>
    tpu.vector_store %arg7[%c0_37, %c0_38, %c256_39], %91 {strides = array<i32>} : memref<1x1x384xf32, #tpu.memory_space<vmem>>, vector<1x1x128xf32>,
    %c0_40 = arith.constant 0 : index
    %c0_41 = arith.constant 0 : index
    %92 = vector.load %arg8[%c0_40, %c0_41] : memref<1x128xf32, #tpu.memory_space<vmem>>, vector<1x128xf32>
    tpu.vector_store %arg8[%c0_40, %c0_41], %66 {strides = array<i32>} : memref<1x128xf32, #tpu.memory_space<vmem>>, vector<1x128xf32>,
    return
  }
  func.func @transform_0(%arg0: i32, %arg1: memref<8xi32, #tpu.memory_space<smem>>) -> (i32, i32, i32) {
    %0 = arith.index_cast %arg0 : i32 to index
    %1 = memref.load %arg1[%0] : memref<8xi32, #tpu.memory_space<smem>>
    %c0_i32 = arith.constant 0 : i32
    %c0_i32_0 = arith.constant 0 : i32
    %c0_i32_1 = arith.constant 0 : i32
    return %1, %c0_i32, %c0_i32_0 : i32, i32, i32
  }
  func.func @transform_1(%arg0: i32, %arg1: memref<8xi32, #tpu.memory_space<smem>>) -> (i32, i32) {
    %c0_i32 = arith.constant 0 : i32
    %c0_i32_0 = arith.constant 0 : i32
    %c0_i32_1 = arith.constant 0 : i32
    return %c0_i32, %c0_i32_0 : i32, i32
  }
  func.func @transform_2(%arg0: i32, %arg1: memref<8xi32, #tpu.memory_space<smem>>) -> (i32, i32) {
    %c0_i32 = arith.constant 0 : i32
    %c0_i32_0 = arith.constant 0 : i32
    %c0_i32_1 = arith.constant 0 : i32
    return %c0_i32, %c0_i32_0 : i32, i32
  }
  func.func @transform_3(%arg0: i32, %arg1: memref<8xi32, #tpu.memory_space<smem>>) -> (i32, i32) {
    %c0_i32 = arith.constant 0 : i32
    %c0_i32_0 = arith.constant 0 : i32
    %c0_i32_1 = arith.constant 0 : i32
    return %c0_i32, %c0_i32_0 : i32, i32
  }
  func.func @transform_4(%arg0: i32, %arg1: memref<8xi32, #tpu.memory_space<smem>>) -> (i32, i32) {
    %c0_i32 = arith.constant 0 : i32
    %c0_i32_0 = arith.constant 0 : i32
    %c0_i32_1 = arith.constant 0 : i32
    return %c0_i32, %c0_i32_0 : i32, i32
  }
  func.func @transform_5(%arg0: i32, %arg1: memref<8xi32, #tpu.memory_space<smem>>) -> (i32, i32, i32) {
    %c0_i32 = arith.constant 0 : i32
    %c0_i32_0 = arith.constant 0 : i32
    %c0_i32_1 = arith.constant 0 : i32
    return %arg0, %c0_i32, %c0_i32_0 : i32, i32, i32
  }
}

</mosaic_0001>

<bundles_post_ra>
// kernel: tpu_custom_call.1
= control target key start
LH: loop header
LB: loop body
LE: loop exit
PB: predicated region body
PF: predicated region fallthrough
CT: control target
= control target key end

     0   :  { %s1822_s24 = smov [#allocation4]   ;;  %s2078_s0 = inlined_call_operand.vmem [shape: s32[8], index: 0, kind: input, shape index: {}]   ;;  %s2079_s1 = inlined_call_operand.vmem [shape: bf16[64,1,128], index: 1, kind: input, shape index: {}]   ;;  %s2080_s2 = inlined_call_operand.vmem [shape: f32[1,128], index: 2, kind: input, shape index: {}]   ;;  %s2081_s3 = inlined_call_operand.vmem [shape: bf16[128,128], index: 3, kind: input, shape index: {}]   ;;  %s2082_s4 = inlined_call_operand.hbm [shape: bf16[128,1280], index: 4, kind: input, shape index: {}]   ;;  %s2083_s5 = inlined_call_operand.vmem [shape: f32[1,1280], index: 5, kind: input, shape index: {}]   ;;  %s2084_s6 = inlined_call_operand.hbm [shape: f32[8,1,384], index: 6, kind: output, shape index: {}]  }
   0x1   :  { %s12_s23 = sshll.u32 %s2078_s0, 4  ;;  %s13_s23 = int_to_ptr.vmem [resolvable:$true] %s12_s23 }
   0x2   :  { %15 = dma.vmem_to_smem %s13_s23, 16, %s1822_s24, [#allocation3] }
   0x3   :  { %1796 = dma.done.wait [#allocation3], 16 }
   0x4   :  { %1797 = vsyncadd [#allocation3], 4294967280 }
   0x5   :  { %18 = sfence }
   0x6   :  { %19 = vsyncpa [#allocation6], 0 }
   0x7   :  { %20 = vsyncpa [#allocation7], 0 }
   0x8   :  { %22 = vsyncpa [#allocation7 + $0x1], 0  ;;  %s1864_s25 = smov 0   ;;  %s1866_s26 = smov 0  }
   0x9   :  { %s1868_s27 = smov 0   ;;  %s1870_s28 = smov 0  }
   0xa LB: > { %s1885_s0 = sadd.s32 4294967295, %s1820_s28   ;;  %s1186_s29 = sadd.s32 4294967294, %s1820_s28   ;;  %s1820_s28 = sphi %s1870_s28, %s2092_s28   ;;  %s1816_s27 = sphi %s1868_s27, %s2091_s27   ;;  %s1812_s26 = sphi %s1866_s26, %s2090_s26   ;;  %s1808_s25 = sphi %s1864_s25, %s2089_s25  }
   0xb   : > { %s1889_s30 = sadd.s32 1, %s1820_s28   ;;  %s147_s7 = sadd.s32 1, %s1816_s27 }
   0xc   : > { %s144_s8 = ssub.s32 %s1820_s28, %s1889_s30  ;;  %p157_p0 = scmp.ne.s32.totalorder %s1816_s27, %s1812_s26 }
   0xd   : > { %p145_p1 = scmp.eq.s32.totalorder %s144_s8, 0  ;;  %p158_p2 = scmp.eq.s32.totalorder %s1885_s0, 7 }
   0xe   : > { %p163_p3 = scmp.ne.s32.totalorder %s1812_s26, %s1808_s25  ;;  %p164_p4 = scmp.eq.s32.totalorder %s1186_s29, 7 }
   0xf   : > { %s1900_s9 = scalar_select %p145_p1, %s1816_s27, %s147_s7  }
  0x10   : > { %p1902_p5 = por %p158_p2, %p157_p0  ;;  %p1906_p6 = por %p164_p4, %p163_p3 }
  0x11   : > { %p1187_p7 = scmp.ge.s32.totalorder %s1820_s28, 1  ;;  %p171_p8 = scmp.lt.s32.totalorder %s1820_s28, 9 }
  0x12   : > { %p1188_p9 = scmp.ne.s32.totalorder %s1885_s0, 0  ;;  %p1653_p10 = scmp.eq.s32.totalorder %s1885_s0, 0 }
  0x13   : > { %p172_p11 = pnand %p1187_p7, %p171_p8  ;;  %s188_s14 = sshll.u32 %s2082_s4, 4  ;;  %s189_s14 = int_to_ptr.hbm [resolvable:$true] %s188_s14 }
  0x14   : > { %s1823_s15 = smov [#allocation5]   ;;  %s1824_s17 = smov 640  }
  0x15   : > { %p1645_p12 = pneg %p172_p11  ;;  %s190_s16 = sshll.u32 %s1823_s15, 4  ;;  %s191_s16 = int_to_ptr.vmem [resolvable:$true] %s190_s16 }
  0x16   : > { %s1825_s18 = smov 40   ;;  %217 = sbr.rel (%p172_p11) target bundleno = 1216 (0x4c0), region = 40 }
  0x17   : > { %p1646_p13 = pnand %p1653_p10, %p1645_p12 }
  0x19   : > { %1648 = dma.hbm_to_vmem [thread:$0]  (!%p1646_p13), %s189_s14, 10240, %s191_s16, [#allocation6], %s1824_s17, %s1824_s17, %s1825_s18  }
  0x1b   : > { %1799 = dma.done.wait (%p1653_p10), [#allocation6], 10240  }
  0x1c   : > { %1801 = vsyncadd (%p1653_p10), [#allocation6], 4294957056  ;;  %s242_s19 = sand.u32 1, %s1812_s26   ;;  %s245_s20 = sld [smem:[#allocation4 + %s1885_s0]] }
  0x1d   : > { %s1637_s21 = smul.u32 3, %s242_s19 }
  0x1f   : > { %s1933_s29 = scalar_lea.vmem [#allocation8], %s1637_s21 }
  0x21   : > { %253 = sbr.rel (%p1188_p9) target bundleno = 40 (0x28), region = 48 }
  0x22   : > { %p246_p0 = scmp.lt.s32.totalorder %s245_s20, 63 }
  0x24   : > { %s2094_s20 = smov (!%p246_p0, %s245_s20), 63 }
  0x25   : > { %s248_s24 = scalar_lea.vmem %s2079_s1, %s2094_s20 }
  0x26   : > { %v254_v0 = vld [vmem:[%s2080_s2] sm:$0x1] }
  0x27   : > { %255 = vst [vmem:[#allocation2] sm:$0x1] %v254_v0 }
  0x28 PF: > { %v1307_v1 = vld [vmem:[#allocation5 + $0x238] sm:$0xf]  ;;  %v1579_v2 = vld [vmem:[#allocation5 + $0x25c] sm:$0xf0]  ;;  %v1291_v3 = vld [vmem:[#allocation5 + $0x1e8] sm:$0xf] }
  0x29   : > { %v1308_v4 = vor.u32 %v1579_v2, %v1307_v1  ;;  %v1575_v5 = vld [vmem:[#allocation5 + $0x20c] sm:$0xf0]  ;;  %v1275_v7 = vld [vmem:[#allocation5 + $0x198] sm:$0xf]  ;;  %v1571_v8 = vld [vmem:[#allocation5 + $0x1bc] sm:$0xf0] }
  0x2a   : > { %v1292_v6 = vor.u32 %v1575_v5, %v1291_v3  ;;  %v1276_v9 = vor.u32 %v1571_v8, %v1275_v7  ;;  %v1259_v10 = vld [vmem:[#allocation5 + $0x148] sm:$0xf]  ;;  %v1567_v11 = vld [vmem:[#allocation5 + $0x16c] sm:$0xf0]  ;;  %v1243_v13 = vld [vmem:[#allocation5 + $0xf8] sm:$0xf] }
  0x2b   : > { %461 = vmatpush.bf16.msra.mxu0 %v1308_v4  ;;  %v1260_v12 = vor.u32 %v1567_v11, %v1259_v10  ;;  %v1563_v14 = vld [vmem:[#allocation5 + $0x11c] sm:$0xf0]  ;;  %v1227_v16 = vld [vmem:[#allocation5 + $0xa8] sm:$0xf]  ;;  %v1559_v17 = vld [vmem:[#allocation5 + $0xcc] sm:$0xf0] }
  0x2c   : > { %v1244_v15 = vor.u32 %v1563_v14, %v1243_v13  ;;  %v1228_v18 = vor.u32 %v1559_v17, %v1227_v16  ;;  %v1211_v19 = vld [vmem:[#allocation5 + $0x58] sm:$0xf]  ;;  %v1555_v20 = vld [vmem:[#allocation5 + $0x7c] sm:$0xf0]  ;;  %v1195_v22 = vld [vmem:[#allocation5 + $0x8] sm:$0xf] }
  0x2d   : > { %v1212_v21 = vor.u32 %v1555_v20, %v1211_v19  ;;  %v1551_v23 = vld [vmem:[#allocation5 + $0x2c] sm:$0xf0]  ;;  %v1596_v25 = vld [vmem:[#allocation5 + $0x254] sm:$0xf0]  ;;  %v1371_v29 = vld [vmem:[#allocation5 + $0x1e0] sm:$0xf] }
  0x2e   : > { %v1379_v24 = vld [vmem:[#allocation5 + $0x230] sm:$0xf]  ;;  %v1196_v26 = vor.u32 %v1551_v23, %v1195_v22  ;;  %v1940_v27 = vld [vmem:[#allocation2] sm:$0x1]  ;;  %v1594_v30 = vld [vmem:[#allocation5 + $0x204] sm:$0xf0] }
  0x2f   : > { %462 = vmatpush.bf16.msra.mxu0 %v1292_v6  ;;  %v1380_v28 = vor.u32 %v1596_v25, %v1379_v24  ;;  %v1944_v31 = vpack.c.bf16 %v1940_v27, %v1940_v27  ;;  %v1372_v32 = vor.u32 %v1594_v30, %v1371_v29  ;;  %v1363_v33 = vld [vmem:[#allocation5 + $0x190] sm:$0xf]  ;;  %v1592_v34 = vld [vmem:[#allocation5 + $0x1b4] sm:$0xf0]  ;;  %v1355_v36 = vld [vmem:[#allocation5 + $0x140] sm:$0xf] }
  0x30   : > { %v1364_v35 = vor.u32 %v1592_v34, %v1363_v33  ;;  %v1590_v37 = vld [vmem:[#allocation5 + $0x164] sm:$0xf0]  ;;  %v1347_v39 = vld [vmem:[#allocation5 + $0xf0] sm:$0xf]  ;;  %v1588_v40 = vld [vmem:[#allocation5 + $0x114] sm:$0xf0] }
  0x31   : > { %v1356_v38 = vor.u32 %v1590_v37, %v1355_v36  ;;  %v1348_v41 = vor.u32 %v1588_v40, %v1347_v39  ;;  %v1339_v42 = vld [vmem:[#allocation5 + $0xa0] sm:$0xf]  ;;  %v1586_v43 = vld [vmem:[#allocation5 + $0xc4] sm:$0xf0]  ;;  %v1331_v45 = vld [vmem:[#allocation5 + $0x50] sm:$0xf] }
  0x32   : > { %v1340_v44 = vor.u32 %v1586_v43, %v1339_v42  ;;  %v1584_v46 = vld [vmem:[#allocation5 + $0x74] sm:$0xf0]  ;;  %v1323_v48 = vld [vmem:[#allocation5] sm:$0xf]  ;;  %v1582_v49 = vld [vmem:[#allocation5 + $0x24] sm:$0xf0] }
  0x33   : > { %463 = vmatpush.bf16.msra.mxu0 %v1276_v9  ;;  %v1332_v47 = vor.u32 %v1584_v46, %v1331_v45  ;;  %v1324_v50 = vor.u32 %v1582_v49, %v1323_v48  ;;  %v1952_v51 = vld [vmem:[%s248_s24] sm:$0x1]  ;;  %v1958_v54 = vld [vmem:[%s2083_s5 + $0x2] sm:$0xf]  ;;  %vm642_vm0 = vcmask 1040384   ;;  %s1638_s7 = smul.u32 3, %s1885_s0 }
  0x34   : > { %v1963_v55 = vld [vmem:[%s2083_s5] sm:$0x3]  ;;  %v453_v56 = vperm.slane %v1958_v54, 0  ;;  %v1309_v1 = vld [vmem:[#allocation5 + $0x260] sm:$0xf0]  ;;  %s1115_s14 = sshll.u32 %s1933_s29, 4  ;;  %s1116_s14 = int_to_ptr.vmem [resolvable:$true] %s1115_s14 }
  0x35   : > { %v611_v57 = vperm.slane %v1963_v55, 0  ;;  %v1577_v0 = vld [vmem:[#allocation5 + $0x23c] sm:$0xf]  ;;  %v1573_v2 = vld [vmem:[#allocation5 + $0x1ec] sm:$0xf]  ;;  %s1113_s13 = scalar_lea.hbm %s2084_s6, %s1638_s7  ;;  %s1103_s16 = scalar_lea.sflag [#allocation7], %s242_s19 }
  0x36   : > { %v1312_v3 = vor.u32 %v1577_v0, %v1309_v1  ;;  %v1293_v4 = vld [vmem:[#allocation5 + $0x210] sm:$0xf0]  ;;  %v1315_v5 = vld [vmem:[#allocation5 + $0x240] sm:$0xf]  ;;  %v1580_v6 = vld [vmem:[#allocation5 + $0x264] sm:$0xf0] }
  0x37   : > { %464 = vmatpush.bf16.msra.mxu0 %v1260_v12  ;;  %v1316_v7 = vor.u32 %v1580_v6, %v1315_v5  ;;  %v1299_v8 = vld [vmem:[#allocation5 + $0x1f0] sm:$0xf]  ;;  %v1296_v9 = vor.u32 %v1573_v2, %v1293_v4  ;;  %v1576_v10 = vld [vmem:[#allocation5 + $0x214] sm:$0xf0]  ;;  %v1569_v11 = vld [vmem:[#allocation5 + $0x19c] sm:$0xf] }
  0x38   : > { %474 = vmatpush.bf16.msra.mxu1 %v1312_v3  ;;  %v1277_v12 = vld [vmem:[#allocation5 + $0x1c0] sm:$0xf0]  ;;  %v1300_v13 = vor.u32 %v1576_v10, %v1299_v8  ;;  %v1283_v14 = vld [vmem:[#allocation5 + $0x1a0] sm:$0xf]  ;;  %v1565_v17 = vld [vmem:[#allocation5 + $0x14c] sm:$0xf] }
  0x39   : > { %487 = vmatpush.bf16.msra.mxu2 %v1316_v7  ;;  %v1280_v16 = vor.u32 %v1569_v11, %v1277_v12  ;;  %v1267_v20 = vld [vmem:[#allocation5 + $0x150] sm:$0xf]  ;;  %v1561_v23 = vld [vmem:[#allocation5 + $0xfc] sm:$0xf]  ;;  %v1245_v24 = vld [vmem:[#allocation5 + $0x120] sm:$0xf0] }
  0x3a   : > { %v1248_v29 = vor.u32 %v1561_v23, %v1245_v24  ;;  %v1557_v30 = vld [vmem:[#allocation5 + $0xac] sm:$0xf]  ;;  %v1235_v34 = vld [vmem:[#allocation5 + $0xb0] sm:$0xf]  ;;  %v1553_v39 = vld [vmem:[#allocation5 + $0x5c] sm:$0xf] }
  0x3b   : > { %465 = vmatpush.bf16.msra.mxu0 %v1244_v15  ;;  %v1572_v15 = vld [vmem:[#allocation5 + $0x1c4] sm:$0xf0]  ;;  %v1213_v40 = vld [vmem:[#allocation5 + $0x80] sm:$0xf0]  ;;  %v1219_v42 = vld [vmem:[#allocation5 + $0x60] sm:$0xf] }
  0x3c   : > { %475 = vmatpush.bf16.msra.mxu1 %v1296_v9  ;;  %v1284_v19 = vor.u32 %v1572_v15, %v1283_v14  ;;  %v1556_v43 = vld [vmem:[#allocation5 + $0x84] sm:$0xf0]  ;;  %v1216_v45 = vor.u32 %v1553_v39, %v1213_v40  ;;  %v1549_v46 = vld [vmem:[#allocation5 + $0xc] sm:$0xf]  ;;  %v1595_v49 = vld [vmem:[#allocation5 + $0x234] sm:$0xf] }
  0x3d   : > { %488 = vmatpush.bf16.msra.mxu2 %v1300_v13  ;;  %v1220_v48 = vor.u32 %v1556_v43, %v1219_v42  ;;  %v1591_v1 = vld [vmem:[#allocation5 + $0x194] sm:$0xf]  ;;  %v1365_v2 = vld [vmem:[#allocation5 + $0x1b8] sm:$0xf0]  ;;  %v1589_v5 = vld [vmem:[#allocation5 + $0x144] sm:$0xf] }
  0x3e   : > { %v1603_v3 = vld [vmem:[%s2081_s3 + $0x30] sm:$0xff]  ;;  %v1368_v4 = vor.u32 %v1591_v1, %v1365_v2  ;;  %v1602_v7 = vld [vmem:[%s2081_s3 + $0x28] sm:$0xff]  ;;  %v1349_v10 = vld [vmem:[#allocation5 + $0x118] sm:$0xf0]  ;;  %s1117_s15 = sshll.u32 %s1113_s13, 4  ;;  %s1772_s21 = scalar_lea.hbm %s2084_s6, 24  ;;  %s1118_s15 = int_to_ptr.hbm [resolvable:$true] %s1117_s15 }
  0x3f   : > { %466 = vmatpush.bf16.msra.mxu0 %v1228_v18  ;;  %v1261_v18 = vld [vmem:[#allocation5 + $0x170] sm:$0xf0]  ;;  %v1357_v6 = vld [vmem:[#allocation5 + $0x168] sm:$0xf0]  ;;  %v1601_v12 = vld [vmem:[%s2081_s3 + $0x20] sm:$0xff]  ;;  %s1766_s17 = sshra.s32 %s1118_s15, 4  ;;  %s1767_s17 = int_to_ptr.hbm [resolvable:$true] %s1766_s17 }
  0x40   : > { %476 = vmatpush.bf16.msra.mxu1 %v1280_v16  ;;  %v1264_v22 = vor.u32 %v1565_v17, %v1261_v18  ;;  %v1360_v8 = vor.u32 %v1589_v5, %v1357_v6  ;;  %v1587_v9 = vld [vmem:[#allocation5 + $0xf4] sm:$0xf]  ;;  %v1585_v13 = vld [vmem:[#allocation5 + $0xa4] sm:$0xf]  ;;  %v1341_v14 = vld [vmem:[#allocation5 + $0xc8] sm:$0xf0]  ;;  %p1773_p4 = scmp.lt.s32.totalorder %s1767_s17, %s2084_s6 }
  0x41   : > { %489 = vmatpush.bf16.msra.mxu2 %v1284_v19  ;;  %v1352_v11 = vor.u32 %v1587_v9, %v1349_v10  ;;  %v1344_v15 = vor.u32 %v1585_v13, %v1341_v14  ;;  %v1600_v16 = vld [vmem:[%s2081_s3 + $0x18] sm:$0xff]  ;;  %v1598_v24 = vld [vmem:[%s2081_s3 + $0x8] sm:$0xff]  ;;  %s1768_s0 = scalar_lea.hbm %s1767_s17, 3 }
  0x42   : > { %v1583_v17 = vld [vmem:[#allocation5 + $0x54] sm:$0xf]  ;;  %v1333_v18 = vld [vmem:[#allocation5 + $0x78] sm:$0xf0]  ;;  %v1628_v42 = vld [vmem:[#allocation5 + $0x274] sm:$0xf0]  ;;  %p1769_p1 = scmp.ne.s32.totalorder %s1767_s17, %s1768_s0  ;;  %p1774_p7 = scmp.lt.s32.totalorder %s1772_s21, %s1768_s0 }
  0x43   : > { %467 = vmatpush.bf16.msra.mxu0 %v1212_v21  ;;  %v1568_v21 = vld [vmem:[#allocation5 + $0x174] sm:$0xf0]  ;;  %v1336_v19 = vor.u32 %v1583_v17, %v1333_v18  ;;  %v1566_v39 = vld [vmem:[#allocation5 + $0x154] sm:$0xf]  ;;  %v1269_v43 = vld [vmem:[#allocation5 + $0x178] sm:$0xf0] }
  0x44   : > { %v1268_v25 = vor.u32 %v1568_v21, %v1267_v20  ;;  %477 = vmatpush.bf16.msra.mxu1 %v1264_v22  ;;  %v1599_v20 = vld [vmem:[%s2081_s3 + $0x10] sm:$0xff]  ;;  %v1581_v21 = vld [vmem:[#allocation5 + $0x4] sm:$0xf]  ;;  %v1237_v6 = vld [vmem:[#allocation5 + $0xd8] sm:$0xf0]  ;;  %p1770_p2 = pnand %p1769_p1, %p1902_p5  ;;  %p1775_p8 = por %p1774_p7, %p1773_p4 }
  0x45   : > { %v1325_v22 = vld [vmem:[#allocation5 + $0x28] sm:$0xf0]  ;;  %v1469_v1 = vld [vmem:[#allocation5 + $0x180] sm:$0xf0]  ;;  %v1558_v5 = vld [vmem:[#allocation5 + $0xb4] sm:$0xf] }
  0x46   : > { %490 = vmatpush.bf16.msra.mxu2 %v1268_v25  ;;  %v1328_v23 = vor.u32 %v1581_v21, %v1325_v22  ;;  %v1597_v25 = vld [vmem:[%s2081_s3] sm:$0xff]  ;;  %v1221_v14 = vld [vmem:[#allocation5 + $0x88] sm:$0xf0]  ;;  %v1550_v22 = vld [vmem:[#allocation5 + $0x14] sm:$0xf]  ;;  %p1771_p3 = pneg %p1770_p2 }
  0x47   : > { %468 = vmatpush.bf16.msra.mxu0 %v1196_v26  ;;  %v1251_v26 = vld [vmem:[#allocation5 + $0x100] sm:$0xf]  ;;  %v1554_v13 = vld [vmem:[#allocation5 + $0x64] sm:$0xf] }
  0x48   : > { %478 = vmatpush.bf16.msra.mxu1 %v1248_v29  ;;  %v1574_v29 = vld [vmem:[#allocation5 + $0x1f4] sm:$0xf]  ;;  %p1776_p9 = pnand %p1775_p8, %p1771_p3 }
  0x4a   : > { %469 = vmatmul.bf16.vlgmr.msra.gmra.mxu0 %v1944_v31 }
  0x4b   : > { %615 = vmatpush.bf16.msrb.mxu0 %v1380_v28  ;;  %v1564_v28 = vld [vmem:[#allocation5 + $0x124] sm:$0xf0] }
  0x4c   : > { %v1252_v33 = vor.u32 %v1564_v28, %v1251_v26  ;;  %v1578_v26 = vld [vmem:[#allocation5 + $0x244] sm:$0xf]  ;;  %v1317_v28 = vld [vmem:[#allocation5 + $0x268] sm:$0xf0] }
  0x4e   : > { %491 = vmatpush.bf16.msra.mxu2 %v1252_v33 }
  0x4f   : > { %616 = vmatpush.bf16.msrb.mxu0 %v1372_v32  ;;  %v1229_v32 = vld [vmem:[#allocation5 + $0xd0] sm:$0xf0] }
  0x50   : > { %v1232_v37 = vor.u32 %v1557_v30, %v1229_v32  ;;  %v1320_v30 = vor.u32 %v1578_v26, %v1317_v28  ;;  %v1301_v32 = vld [vmem:[#allocation5 + $0x218] sm:$0xf0]  ;;  %v1627_v26 = vld [vmem:[#allocation5 + $0x26c] sm:$0xf0] }
  0x51   : > { %v1304_v33 = vor.u32 %v1574_v29, %v1301_v32 }
  0x52   : > { %479 = vmatpush.bf16.msra.mxu1 %v1232_v37  ;;  %500 = vmatpush.bf16.msra.mxu3 %v1320_v30  ;;  %v1505_v37 = vld [vmem:[#allocation5 + $0x270] sm:$0xf0] }
  0x53   : > { %617 = vmatpush.bf16.msrb.mxu0 %v1364_v35  ;;  %v1560_v35 = vld [vmem:[#allocation5 + $0xd4] sm:$0xf0] }
  0x56   : > { %480 = vmatpush.bf16.msra.mxu1 %v1216_v45  ;;  %501 = vmatpush.bf16.msra.mxu3 %v1304_v33  ;;  %v1493_v45 = vld [vmem:[#allocation5 + $0x220] sm:$0xf0] }
  0x57   : > { %618 = vmatpush.bf16.msrb.mxu0 %v1356_v38 }
  0x5b   : > { %619 = vmatpush.bf16.msrb.mxu0 %v1348_v41  ;;  %v1236_v41 = vor.u32 %v1560_v35, %v1235_v34  ;;  %v1570_v34 = vld [vmem:[#allocation5 + $0x1a4] sm:$0xf]  ;;  %v1285_v35 = vld [vmem:[#allocation5 + $0x1c8] sm:$0xf0] }
  0x5d   : > { %492 = vmatpush.bf16.msra.mxu2 %v1236_v41  ;;  %v1511_v41 = vld [vmem:[#allocation5 + $0x250] sm:$0xf] }
  0x5f   : > { %620 = vmatpush.bf16.msrb.mxu0 %v1340_v44 }
  0x61   : > { %493 = vmatpush.bf16.msra.mxu2 %v1220_v48  ;;  %v1625_v48 = vld [vmem:[#allocation5 + $0x224] sm:$0xf0] }
  0x63   : > { %621 = vmatpush.bf16.msrb.mxu0 %v1332_v47  ;;  %v1197_v47 = vld [vmem:[#allocation5 + $0x30] sm:$0xf0] }
  0x67   : > { %622 = vmatpush.bf16.msrb.mxu0 %v1324_v50  ;;  %v1381_v50 = vld [vmem:[#allocation5 + $0x258] sm:$0xf0] }
  0x6a   : > { %623 = vmatmul.bf16.vlgmr.msrb.gmra.mxu0 %v1952_v51 }
  0xc7   : > { %v470_v52 = vpop.f32.mrf.mxu0 }
  0xc8   : > { %v471_v59 = vadd.f32 %v470_v52, %v453_v56  ;;  %v1203_v52 = vld [vmem:[#allocation5 + $0x10] sm:$0xf]  ;;  %v1200_v56 = vor.u32 %v1549_v46, %v1197_v47  ;;  %v1499_v47 = vld [vmem:[#allocation5 + $0x200] sm:$0xf] }
  0xca   : > { %481 = vmatpush.bf16.msra.mxu1 %v1200_v56  ;;  %v1272_v56 = vor.u32 %v1566_v39, %v1269_v43  ;;  %v1467_v43 = vld [vmem:[#allocation5 + $0x158] sm:$0xf] }
  0xcd   : > { %482 = vmatmul.bf16.vlgmr.msra.gmra.mxu1 %v1944_v31 }
  0xcf   : > { %v472_v53 = vpop.f32.mrf.mxu0 }
  0xd0   : > { %v1552_v53 = vld [vmem:[#allocation5 + $0x34] sm:$0xf0] }
  0xe7   : > { %v624_v58 = vpop.f32.mrf.mxu0 }
  0xe8   : > { %v625_v60 = vadd.f32 %v624_v58, %v611_v57  ;;  %v1384_v57 = vor.u32 %v1595_v49, %v1381_v50  ;;  %v1204_v58 = vor.u32 %v1552_v53, %v1203_v52  ;;  %v1500_v50 = vor.u32 %v1625_v48, %v1499_v47  ;;  %v1620_v52 = vld [vmem:[#allocation5 + $0x1ac] sm:$0xf]  ;;  %v1481_v53 = vld [vmem:[#allocation5 + $0x1d0] sm:$0xf0]  ;;  %v1615_v47 = vld [vmem:[#allocation5 + $0x12c] sm:$0xf0] }
  0xe9   : > { %v1614_v48 = vld [vmem:[#allocation5 + $0x10c] sm:$0xf] }
  0xea   : > { %v641_v61 = vadd.f32 %v625_v60, %v471_v59  ;;  %v1593_v59 = vld [vmem:[#allocation5 + $0x1e4] sm:$0xf]  ;;  %v1373_v60 = vld [vmem:[#allocation5 + $0x208] sm:$0xf0]  ;;  %628 = vmatpush.bf16.msrb.mxu1 %v1384_v57  ;;  %494 = vmatpush.bf16.msra.mxu2 %v1204_v58  ;;  %v1487_v57 = vld [vmem:[#allocation5 + $0x1b0] sm:$0xf] }
  0xeb   : > { %v1376_v0 = vor.u32 %v1593_v59, %v1373_v60  ;;  %v1562_v58 = vld [vmem:[#allocation5 + $0x104] sm:$0xf]  ;;  %v1253_v59 = vld [vmem:[#allocation5 + $0x128] sm:$0xf0]  ;;  %v1622_v60 = vld [vmem:[#allocation5 + $0x1d4] sm:$0xf0] }
  0xec   : > { %v643_v62 = vsel %vm642_vm0, %v641_v61, -inf  ;;  %v1256_v2 = vor.u32 %v1562_v58, %v1253_v59  ;;  %v1443_v58 = vld [vmem:[#allocation5 + $0xb8] sm:$0xf]  ;;  %v1612_v59 = vld [vmem:[#allocation5 + $0xdc] sm:$0xf0] }
  0xed   : > { %644 = vmax.xlane.f32.xlu0 %v643_v62  ;;  %v1604_v62 = vld [vmem:[%s2081_s3 + $0x38] sm:$0xff]  ;;  %495 = vmatmul.bf16.vlgmr.msra.gmra.mxu2 %v1944_v31 }
  0xee   : > { %732 = vmatpush.bf16.msrb.mxu2 %v1604_v62  ;;  %629 = vmatpush.bf16.msrb.mxu1 %v1376_v0  ;;  %v1484_v62 = vor.u32 %v1620_v52, %v1481_v53  ;;  %v1617_v0 = vld [vmem:[#allocation5 + $0x15c] sm:$0xf]  ;;  %v1463_v52 = vld [vmem:[#allocation5 + $0x110] sm:$0xf]  ;;  %v1616_v53 = vld [vmem:[#allocation5 + $0x134] sm:$0xf0] }
  0xef   : > { %v626_v63 = vpop.f32.mrf.mxu0 }
  0xf2   : > { %733 = vmatpush.bf16.msrb.mxu2 %v1603_v3  ;;  %630 = vmatpush.bf16.msrb.mxu1 %v1368_v4  ;;  %v1475_v3 = vld [vmem:[#allocation5 + $0x160] sm:$0xf]  ;;  %v1619_v4 = vld [vmem:[#allocation5 + $0x184] sm:$0xf0] }
  0xf3   : > { %v1476_v10 = vor.u32 %v1619_v4, %v1475_v3  ;;  %v1431_v4 = vld [vmem:[#allocation5 + $0x68] sm:$0xf] }
  0xf6   : > { %734 = vmatpush.bf16.msrb.mxu2 %v1602_v7  ;;  %631 = vmatpush.bf16.msrb.mxu1 %v1360_v8  ;;  %v1472_v8 = vor.u32 %v1617_v0, %v1469_v1  ;;  %v1613_v0 = vld [vmem:[#allocation5 + $0xe4] sm:$0xf0] }
  0xfa   : > { %632 = vmatpush.bf16.msrb.mxu1 %v1352_v11  ;;  %735 = vmatpush.bf16.msrb.mxu2 %v1601_v12  ;;  %v1240_v11 = vor.u32 %v1558_v5, %v1237_v6  ;;  %v1609_v5 = vld [vmem:[#allocation5 + $0x8c] sm:$0xf0]  ;;  %v1608_v6 = vld [vmem:[#allocation5 + $0x6c] sm:$0xf] }
  0xfe   : > { %633 = vmatpush.bf16.msrb.mxu1 %v1344_v15  ;;  %736 = vmatpush.bf16.msrb.mxu2 %v1600_v16 }
 0x102   : > { %634 = vmatpush.bf16.msrb.mxu1 %v1336_v19  ;;  %737 = vmatpush.bf16.msrb.mxu2 %v1599_v20  ;;  %v1094_v19 = vlaneseq  ;;  %v1224_v20 = vor.u32 %v1554_v13, %v1221_v14  ;;  %v1419_v14 = vld [vmem:[#allocation5 + $0x18] sm:$0xf] }
 0x104   : > { %vm2001_vm5 = vcmp.lt.s32.totalorder %v1094_v19, 128  ;;  %v1421_v19 = vld [vmem:[#allocation5 + $0x40] sm:$0xf0] }
 0x106   : > { %635 = vmatpush.bf16.msrb.mxu1 %v1328_v23  ;;  %738 = vmatpush.bf16.msrb.mxu2 %v1598_v24  ;;  %v1205_v23 = vld [vmem:[#allocation5 + $0x38] sm:$0xf0] }
 0x107   : > { %v1208_v32 = vor.u32 %v1550_v22, %v1205_v23 }
 0x109   : > { %636 = vmatmul.bf16.vlgmr.msrb.gmra.mxu1 %v1952_v51  ;;  %v1512_v51 = vor.u32 %v1628_v42, %v1511_v41  ;;  %v1479_v41 = vld [vmem:[#allocation5 + $0x1a8] sm:$0xf]  ;;  %v1621_v42 = vld [vmem:[#allocation5 + $0x1cc] sm:$0xf0] }
 0x10a   : > { %739 = vmatpush.bf16.msrb.mxu2 %v1597_v25  ;;  %v1503_v25 = vld [vmem:[#allocation5 + $0x248] sm:$0xf] }
 0x10b   : > { %942 = vmatpush.bf16.msra.mxu1 %v1512_v51  ;;  %v1618_v51 = vld [vmem:[#allocation5 + $0x17c] sm:$0xf0] }
 0x10f   : > { %943 = vmatpush.bf16.msra.mxu1 %v1500_v50  ;;  %v1457_v50 = vld [vmem:[#allocation5 + $0x130] sm:$0xf0] }
 0x14a   : > { %v1999_v18 = vpop.f32.mrf.mxu1 }
 0x152   : > { %v485_v39 = vpop.f32.mrf.mxu1 }
 0x160   : > { %v645_v36 = vpop.xlane.xlu0 %644 }
 0x161   : > { %v646_v38 = vsub.f32 %v641_v61, %v645_v36  ;;  %v1626_v36 = vld [vmem:[#allocation5 + $0x24c] sm:$0xf] }
 0x162   : > { %v1508_v40 = vor.u32 %v1626_v36, %v1505_v37  ;;  %v1624_v36 = vld [vmem:[#allocation5 + $0x21c] sm:$0xf0] }
 0x163   : > { %v647_v44 = vmul.f32 1.442695, %v646_v38  ;;  %v1288_v38 = vor.u32 %v1570_v34, %v1285_v35  ;;  %v1504_v34 = vor.u32 %v1627_v26, %v1503_v25  ;;  %v1491_v35 = vld [vmem:[#allocation5 + $0x1f8] sm:$0xf] }
 0x164   : > { %929 = vmatpush.bf16.msra.mxu0 %v1508_v40  ;;  %v1492_v40 = vor.u32 %v1624_v36, %v1491_v35  ;;  %v1545_v36 = vld [vmem:[#allocation5 + $0x254] sm:$0xf] }
 0x165   : > { %1692 = vpow2.f32 %v647_v44  ;;  %v1623_v44 = vld [vmem:[#allocation5 + $0x1fc] sm:$0xf]  ;;  %502 = vmatpush.bf16.msra.mxu3 %v1288_v38 }
 0x166   : > { %v1496_v46 = vor.u32 %v1623_v44, %v1493_v45  ;;  %v1468_v45 = vor.u32 %v1618_v51, %v1467_v43  ;;  %v1537_v51 = vld [vmem:[#allocation5 + $0x1b4] sm:$0xf] }
 0x168   : > { %930 = vmatpush.bf16.msra.mxu0 %v1496_v46  ;;  %v1455_v46 = vld [vmem:[#allocation5 + $0x108] sm:$0xf] }
 0x169   : > { %503 = vmatpush.bf16.msra.mxu3 %v1272_v56  ;;  %v1460_v56 = vor.u32 %v1614_v48, %v1457_v50  ;;  %v454_v50 = vperm.slane %v1958_v54, 1 }
 0x16b   : > { %v1968_v61 = vpop.eup %1692 }
 0x16c   : > { %v649_v63 = vsel %vm642_vm0, %v1968_v61, 0.0  ;;  %931 = vmatpush.bf16.msra.mxu0 %v1484_v62  ;;  %v1445_v62 = vld [vmem:[#allocation5 + $0xe0] sm:$0xf0] }
 0x16d   : > { %650 = vadd.xlane.f32.xlu0 %v649_v63  ;;  %v1488_v63 = vor.u32 %v1622_v60, %v1487_v57  ;;  %504 = vmatpush.bf16.msra.mxu3 %v1256_v2  ;;  %v1464_v57 = vor.u32 %v1616_v53, %v1463_v52  ;;  %v1444_v60 = vor.u32 %v1612_v59, %v1443_v58 }
 0x16f   : > { %944 = vmatpush.bf16.msra.mxu1 %v1488_v63  ;;  %v1451_v63 = vld [vmem:[#allocation5 + $0xc0] sm:$0xf] }
 0x170   : > { %932 = vmatpush.bf16.msra.mxu0 %v1472_v8  ;;  %v2009_v38 = vpop.f32.mrf.mxu2  ;;  %v1452_v2 = vor.u32 %v1613_v0, %v1451_v63  ;;  %v1432_v8 = vor.u32 %v1609_v5, %v1431_v4  ;;  %v1632_v63 = vld [vmem:[#allocation5 + $0x138] sm:$0xf0]  ;;  %v1525_v0 = vld [vmem:[#allocation5 + $0xc4] sm:$0xf] }
 0x171   : > { %505 = vmatpush.bf16.msra.mxu3 %v1240_v11  ;;  %v1610_v11 = vld [vmem:[#allocation5 + $0x94] sm:$0xf0] }
 0x173   : > { %945 = vmatpush.bf16.msra.mxu1 %v1476_v10  ;;  %v1439_v10 = vld [vmem:[#allocation5 + $0x70] sm:$0xf] }
 0x174   : > { %933 = vmatpush.bf16.msra.mxu0 %v1460_v56  ;;  %v1440_v13 = vor.u32 %v1610_v11, %v1439_v10  ;;  %v1533_v56 = vld [vmem:[#allocation5 + $0x164] sm:$0xf] }
 0x175   : > { %506 = vmatpush.bf16.msra.mxu3 %v1224_v20  ;;  %v1427_v20 = vld [vmem:[#allocation5 + $0x20] sm:$0xf] }
 0x177   : > { %946 = vmatpush.bf16.msra.mxu1 %v1464_v57  ;;  %v1633_v57 = vld [vmem:[#allocation5 + $0x188] sm:$0xf0] }
 0x178   : > { %v498_v44 = vpop.f32.mrf.mxu2  ;;  %v1534_v58 = vor.u32 %v1633_v57, %v1533_v56 }
 0x179   : > { %507 = vmatpush.bf16.msra.mxu3 %v1208_v32  ;;  %v1634_v44 = vld [vmem:[#allocation5 + $0x1d8] sm:$0xf0] }
 0x17b   : > { %947 = vmatpush.bf16.msra.mxu1 %v1452_v2 }
 0x17c   : > { %508 = vmatmul.bf16.vlgmr.msra.gmra.mxu3 %v1944_v31  ;;  %v1611_v31 = vld [vmem:[#allocation5 + $0xbc] sm:$0xf] }
 0x17d   : > { %916 = vmatpush.bf16.msrb.mxu3 %v1504_v34  ;;  %v1448_v1 = vor.u32 %v1611_v31, %v1445_v62 }
 0x17f   : > { %934 = vmatpush.bf16.msra.mxu0 %v1448_v1  ;;  %948 = vmatpush.bf16.msra.mxu1 %v1440_v13  ;;  %v1517_v13 = vld [vmem:[#allocation5 + $0x24] sm:$0xf] }
 0x181   : > { %917 = vmatpush.bf16.msrb.mxu3 %v1492_v40  ;;  %v2018_v40 = vld [vmem:[%s2083_s5 + $0x6] sm:$0x7] }
 0x182   : > { %v911_v43 = vperm.slane %v2018_v40, 1  ;;  %v910_v53 = vperm.slane %v2018_v40, 0 }
 0x186   : > { %v637_v3 = vpop.f32.mrf.mxu1 }
 0x1e0   : > { %v651_v49 = vpop.xlane.xlu0 %650 }
 0x1e1   : > { %1694 = vrcp.f32 %v651_v49  ;;  %v663_v15 = vand.u32 2147483648, %v651_v49  ;;  %v661_v17 = vand.u32 2147483647, %v651_v49  ;;  %vm657_vm2 = vweird.f32 %v651_v49 }
 0x1e3   : > { %v664_v24 = vor.u32 1.1754944e-38, %v663_v15  ;;  %vm662_vm4 = vcmp.eq.f32.partialorder %v661_v17, 8.507059e+37  ;;  %v1606_v15 = vld [vmem:[#allocation5 + $0x3c] sm:$0xf0] }
 0x1e4   : > { %v1420_v17 = vor.u32 %v1606_v15, %v1419_v14  ;;  %v1629_v14 = vld [vmem:[#allocation5 + $0x48] sm:$0xf0] }
 0x1e5   : > { %v1518_v15 = vor.u32 %v1629_v14, %v1517_v13 }
 0x1e7   : > { %v1695_v7 = vpop.eup %1694 }
 0x1e8   : > { %v653_v9 = vmul.f32 %v1695_v7, %v651_v49  ;;  %vm658_vm1 = vweird.f32 %v1695_v7  ;;  %v1456_v49 = vor.u32 %v1615_v47, %v1455_v46  ;;  %v1538_v46 = vor.u32 %v1634_v44, %v1537_v51 }
 0x1e9   : > { %vm659_vm3 = vmor %vm657_vm2, %vm658_vm1 }
 0x1ea   : > { %v654_v12 = vsub.f32 1.0, %v653_v9  ;;  %v1433_v9 = vld [vmem:[#allocation5 + $0x90] sm:$0xf0] }
 0x1ec   : > { %v655_v16 = vmul.f32 %v1695_v7, %v654_v12  ;;  %v1436_v12 = vor.u32 %v1608_v6, %v1433_v9  ;;  %v1630_v9 = vld [vmem:[#allocation5 + $0x98] sm:$0xf0] }
 0x1ee   : > { %v656_v21 = vadd.f32 %v1695_v7, %v655_v16  ;;  %935 = vmatpush.bf16.msra.mxu0 %v1436_v12  ;;  %v1605_v16 = vld [vmem:[#allocation5 + $0x1c] sm:$0xf] }
 0x1ef   : > { %v1424_v22 = vor.u32 %v1605_v16, %v1421_v19 }
 0x1f0   : > { %v660_v28 = vsel %vm659_vm3, %v1695_v7, %v656_v21  ;;  %v639_v7 = vpop.f32.mrf.mxu1  ;;  %v1607_v21 = vld [vmem:[#allocation5 + $0x44] sm:$0xf0] }
 0x1f1   : > { %v665_v29 = vsel %vm662_vm4, %v664_v24, %v660_v28  ;;  %v1428_v23 = vor.u32 %v1607_v21, %v1427_v20  ;;  %v612_v24 = vperm.slane %v1963_v55, 1  ;;  %v1541_v55 = vld [vmem:[#allocation5 + $0x204] sm:$0xf] }
 0x1f2   : > { %v666_v33 = vmul.f32 %v1968_v61, %v665_v29  ;;  %v1480_v61 = vor.u32 %v1621_v42, %v1479_v41  ;;  %936 = vmatpush.bf16.msra.mxu0 %v1424_v22  ;;  %v1635_v41 = vld [vmem:[#allocation5 + $0x228] sm:$0xf0] }
 0x1f3   : > { %949 = vmatpush.bf16.msra.mxu1 %v1428_v23  ;;  %v638_v25 = vadd.f32 %v637_v3, %v612_v24  ;;  %v1542_v42 = vor.u32 %v1635_v41, %v1541_v55  ;;  %v1631_v3 = vld [vmem:[#allocation5 + $0xe8] sm:$0xf0] }
 0x1f4   : > { %v667_v37 = vpack.c.bf16 %v666_v33, %v666_v33  ;;  %1099 = vst.msk [vmem:[%s1933_s29 + $0x1] sm:$0x1] %vm2001_vm5, %v666_v33  ;;  %918 = vmatpush.bf16.msrb.mxu3 %v1480_v61  ;;  %v455_v61 = vperm.slane %v1958_v54, 2  ;;  %v1526_v6 = vor.u32 %v1631_v3, %v1525_v0 }
 0x1f6   : > { %740 = vmatmul.bf16.vlgmr.msrb.gmra.mxu2 %v667_v37  ;;  %v1636_v37 = vld [vmem:[#allocation5 + $0x278] sm:$0xf0]  ;;  %v497_v47 = vadd.f32 %v2009_v38, %v455_v61  ;;  %v1529_v38 = vld [vmem:[#allocation5 + $0x114] sm:$0xf] }
 0x1f7   : > { %v1546_v39 = vor.u32 %v1636_v37, %v1545_v36  ;;  %v1530_v2 = vor.u32 %v1632_v63, %v1529_v38 }
 0x1f8   : > { %919 = vmatpush.bf16.msrb.mxu3 %v1468_v45 }
 0x1f9   : > { %1068 = vmatpush.bf16.msra.mxu2 %v1546_v39 }
 0x1fc   : > { %920 = vmatpush.bf16.msrb.mxu3 %v1456_v49 }
 0x1fd   : > { %1069 = vmatpush.bf16.msra.mxu2 %v1542_v42 }
 0x1ff   : > { %v2013_v29 = vpop.f32.mrf.mxu3 }
 0x200   : > { %921 = vmatpush.bf16.msrb.mxu3 %v1444_v60  ;;  %v484_v60 = vadd.f32 %v1999_v18, %v454_v50 }
 0x201   : > { %1070 = vmatpush.bf16.msra.mxu2 %v1538_v46 }
 0x204   : > { %922 = vmatpush.bf16.msrb.mxu3 %v1432_v8  ;;  %v1521_v8 = vld [vmem:[#allocation5 + $0x74] sm:$0xf] }
 0x205   : > { %1071 = vmatpush.bf16.msra.mxu2 %v1534_v58  ;;  %v1522_v18 = vor.u32 %v1630_v9, %v1521_v8 }
 0x207   : > { %v511_v35 = vpop.f32.mrf.mxu3 }
 0x208   : > { %923 = vmatpush.bf16.msrb.mxu3 %v1420_v17 }
 0x209   : > { %1072 = vmatpush.bf16.msra.mxu2 %v1530_v2 }
 0x20d   : > { %1073 = vmatpush.bf16.msra.mxu2 %v1526_v6 }
 0x211   : > { %1074 = vmatpush.bf16.msra.mxu2 %v1522_v18 }
 0x215   : > { %1075 = vmatpush.bf16.msra.mxu2 %v1518_v15 }
 0x279   : > { %v741_v26 = vpop.f32.mrf.mxu2 }
 0x27a   : > { %v745_v28 = vadd.f32 %v741_v26, %v638_v25  ;;  %v456_v26 = vperm.slane %v1958_v54, 3 }
 0x27c   : > { %v746_v32 = vmax.f32 %v745_v28, 0.0  ;;  %v510_v37 = vadd.f32 %v2013_v29, %v456_v26 }
 0x27e   : > { %v747_v33 = vpack.c.bf16 %v746_v32, %v746_v32 }
 0x280   : > { %924 = vmatmul.bf16.vlgmr.msrb.gmra.mxu3 %v747_v33  ;;  %937 = vmatmul.bf16.vlgmr.msra.gmra.mxu0 %v747_v33 }
 0x281   : > { %950 = vmatmul.bf16.vlgmr.msra.gmra.mxu1 %v747_v33  ;;  %v743_v34 = vpop.f32.mrf.mxu2 }
 0x282   : > { %v912_v34 = vperm.slane %v2018_v40, 2 }
 0x2fd   : > { %v938_v45 = vpop.f32.mrf.mxu0 }
 0x2fe   : > { %v939_v48 = vadd.f32 %v938_v45, %v911_v43  ;;  %v2023_v49 = vpop.f32.mrf.mxu1 }
 0x2ff   : > { %v952_v54 = vadd.f32 %v2023_v49, %v912_v34  ;;  %v1019_v49 = vld [vmem:[%s2083_s5 + $0x9] sm:$0x1] }
 0x300   : > { %v975_v52 = vadd.f32 %v939_v48, %v497_v47 }
 0x302   : > { %v1514_v59 = vmul.f32 -1.442695, %v975_v52 }
 0x303   : > { %v925_v31 = vpop.f32.mrf.mxu3 }
 0x304   : > { %1696 = vpow2.f32 %v1514_v59  ;;  %v926_v62 = vadd.f32 %v925_v31, %v910_v53 }
 0x305   : > { %v940_v1 = vpop.f32.mrf.mxu0 }
 0x306   : > { %v955_v4 = vadd.f32 %v926_v62, %v484_v60  ;;  %v953_v5 = vpop.f32.mrf.mxu1 }
 0x308   : > { %v1513_v7 = vmul.f32 -1.442695, %v955_v4 }
 0x30a   : > { %v1697_v10 = vpop.eup %1696  ;;  %1698 = vpow2.f32 %v1513_v7 }
 0x30b   : > { %v979_v11 = vadd.f32 1.0, %v1697_v10  ;;  %v927_v12 = vpop.f32.mrf.mxu3 }
 0x30d   : > { %1700 = vrcp.f32 %v979_v11  ;;  %v991_v42 = vand.u32 2147483648, %v979_v11  ;;  %vm985_vm11 = vweird.f32 %v979_v11  ;;  %v989_v43 = vand.u32 2147483647, %v979_v11 }
 0x30f   : > { %v992_v44 = vor.u32 1.1754944e-38, %v991_v42  ;;  %vm990_vm13 = vcmp.eq.f32.partialorder %v989_v43, 8.507059e+37 }
 0x310   : > { %v1699_v16 = vpop.eup %1698 }
 0x311   : > { %v959_v17 = vadd.f32 1.0, %v1699_v16 }
 0x313   : > { %1702 = vrcp.f32 %v959_v17  ;;  %v1701_v19 = vpop.eup %1700  ;;  %v971_v25 = vand.u32 2147483648, %v959_v17  ;;  %v969_v32 = vand.u32 2147483647, %v959_v17  ;;  %vm965_vm7 = vweird.f32 %v959_v17 }
 0x314   : > { %v981_v20 = vmul.f32 %v1701_v19, %v979_v11  ;;  %vm986_vm10 = vweird.f32 %v1701_v19 }
 0x315   : > { %v972_v36 = vor.u32 1.1754944e-38, %v971_v25  ;;  %vm970_vm9 = vcmp.eq.f32.partialorder %v969_v32, 8.507059e+37  ;;  %vm987_vm12 = vmor %vm985_vm11, %vm986_vm10 }
 0x316   : > { %v982_v23 = vsub.f32 1.0, %v981_v20 }
 0x318   : > { %v983_v33 = vmul.f32 %v1701_v19, %v982_v23 }
 0x319   : > { %v1703_v21 = vpop.eup %1702 }
 0x31a   : > { %v961_v22 = vmul.f32 %v1703_v21, %v959_v17  ;;  %vm966_vm6 = vweird.f32 %v1703_v21  ;;  %v984_v41 = vadd.f32 %v1701_v19, %v983_v33 }
 0x31b   : > { %vm967_vm8 = vmor %vm965_vm7, %vm966_vm6 }
 0x31c   : > { %v962_v24 = vsub.f32 1.0, %v961_v22  ;;  %v988_v51 = vsel %vm987_vm12, %v1701_v19, %v984_v41 }
 0x31d   : > { %v993_v45 = vsel %vm990_vm13, %v992_v44, %v988_v51 }
 0x31e   : > { %v963_v28 = vmul.f32 %v1703_v21, %v962_v24  ;;  %v998_v29 = vsub.f32 1.0, %v993_v45  ;;  %v1000_v48 = vmul.f32 %v993_v45, %v1940_v27 }
 0x320   : > { %v964_v35 = vadd.f32 %v1703_v21, %v963_v28 }
 0x322   : > { %v968_v39 = vsel %vm967_vm8, %v1703_v21, %v964_v35 }
 0x323   : > { %v973_v55 = vsel %vm970_vm9, %v972_v36, %v968_v39 }
 0x324   : > { %v995_v61 = vmul.f32 %v973_v55, %v510_v37 }
 0x326   : > { %v996_v40 = vadd.f32 %v995_v61, %v952_v54 }
 0x328   : > { %1704 = vtanh.f32 %v996_v40 }
 0x32e   : > { %v1705_v46 = vpop.eup %1704 }
 0x32f   : > { %v999_v47 = vmul.f32 %v1705_v46, %v998_v29 }
 0x331   : > { %v1001_v50 = vadd.f32 %v1000_v48, %v999_v47 }
 0x333   : > { %v1002_v52 = vpack.c.bf16 %v1001_v50, %v1001_v50  ;;  %1101 = vst [vmem:[#allocation2] sm:$0x1] %v1001_v50 }
 0x334   : > { %1100 = vst.msk [vmem:[%s1933_s29 + $0x2] sm:$0x1] %vm2001_vm5, %v1001_v50 }
 0x335   : > { %1076 = vmatmul.bf16.vlgmr.msra.gmra.mxu2 %v1002_v52 }
 0x3b8   : > { %v1077_v53 = vpop.f32.mrf.mxu2 }
 0x3b9   : > { %v1078_v56 = vadd.f32 %v1077_v53, %v1019_v49 }
 0x3bb   : > { %v1081_v57 = vsel %vm642_vm0, %v1078_v56, -inf }
 0x3bc   : > { %1082 = vmax.xlane.f32.xlu1 %v1081_v57 }
 0x3c0   : > { %v1079_v58 = vpop.f32.mrf.mxu2 }
 0x42f   : > { %v1083_v27 = vpop.xlane.xlu1 %1082 }
 0x430   : > { %v1084_v59 = vsub.f32 %v1078_v56, %v1083_v27 }
 0x432   : > { %v1085_v31 = vmul.f32 1.442695, %v1084_v59 }
 0x434   : > { %1706 = vpow2.f32 %v1085_v31 }
 0x43a   : > { %v1707_v60 = vpop.eup %1706 }
 0x43b   : > { %v1087_v62 = vsel %vm642_vm0, %v1707_v60, 0.0 }
 0x43c   : > { %1088 = vadd.xlane.f32.xlu1 %v1087_v62 }
 0x4af   : > { %v1089_v38 = vpop.xlane.xlu1 %1088 }
 0x4b0   : > { %1708 = vlog2.f32 %v1089_v38 }
 0x4b6   : > { %v1709_v63 = vpop.eup %1708 }
 0x4b7   : > { %v1091_v0 = vmul.f32 0.6931472, %v1709_v63 }
 0x4b9   : > { %v1092_v1 = vadd.f32 %v1091_v0, %v1083_v27 }
 0x4bb   : > { %v1093_v2 = vsub.f32 %v1078_v56, %v1092_v1 }
 0x4bd   : > { %1098 = vst.msk [vmem:[%s1933_s29] sm:$0x1] %vm2001_vm5, %v1093_v2 }
 0x4be   : > { %1779 = shalt.err (!%p1776_p9)
}
 0x4bf   : > { %1643 = dma.vmem_to_hbm [thread:$0]  (%p1902_p5), %s1116_s14, 48, %s1118_s15, %s1103_s16  }
 0x4c0 PF: > { %p1655_p10 = scmp.ge.s32.totalorder %s1820_s28, 2  ;;  %s1129_s19 = sand.u32 1, %s1808_s25  }
 0x4c1   : > { %s1130_s29 = scalar_lea.sflag [#allocation7], %s1129_s19 }
 0x4c2   : > { %p1650_p11 = pnand %p1655_p10, %p1906_p6 }
 0x4c4   : > { %p1651_p12 = pneg %p1650_p11 }
 0x4c6   : > { %1803 = dma.done.wait (%p1651_p12), %s1130_s29, 48  }
 0x4c7   : > { %1805 = vsyncadd (%p1651_p12), %s1130_s29, 4294967248  ;;  %p25_p13 = scmp.ge.s32.totalorder %s1889_s30, 10   ;;  %s2089_s25 = smov %s1812_s26 }
 0x4c8   : > { %s2090_s26 = smov %s1816_s27  ;;  %s2091_s27 = smov %s1900_s9 }
 0x4c9   : > { %s2092_s28 = smov %s1889_s30  ;;  %27 = sbr.rel (!%p25_p13) target bundleno = 10 (0xa), region = 84 }
 0x4ce   :  { %1136 = vsyncpa [#allocation6], 1 }
 0x4cf   :  { %1138 = vsyncpa [#allocation6 + $0x1], 1 }
 0x4d0   :  { %1139 = vsyncpa [#allocation7], 1 }
 0x4d1   :  { %1141 = vsyncpa [#allocation7 + $0x1], 1 }

</bundles_post_ra>
